<compile_context>
chip_gen: v7x
topology: tpu7x:2x2x1
jax: 0.10.0
libtpu: 0.0.40
codegen_flags: <defaults>
</compile_context>

<pallas_src>
import jax
import jax.numpy as jnp
from jax import lax
from jax.experimental import pallas as pl
from jax.experimental.pallas import tpu as pltpu


def _make_kernel(n_head: int, eps: float = 1e-5):
    def kernel(x_ref, gn_w_ref, gn_b_ref, w_qkv_ref, b_qkv_ref,
               w_out_ref, b_out_ref, o_ref, y_ref):
        x = x_ref[0]                              # (c, s) f32 -- kept for the residual
        c, s = x.shape
        d = c // n_head

        # ---- GroupNorm(1, c): one fused pass for mean/var, affine folded into scale/shift ----
        inv_n = 1.0 / (c * s)
        x_sum = jnp.sum(x)
        x_sq_sum = jnp.sum(x * x)
        mean = x_sum * inv_n
        var = x_sq_sum * inv_n - mean * mean      # biased variance (matches nn.GroupNorm)
        rstd = lax.rsqrt(var + eps)
        a = gn_w_ref[...] * rstd                  # (c, 1)
        b = gn_b_ref[...] - mean * a              # (c, 1)
        xn = (x * a + b).astype(jnp.bfloat16)     # bf16 only as MXU operand

        # ---- qkv_proj: Conv1d(c, 3c, 1) == channel matmul; q/k scale pre-folded ----
        qkv = jnp.dot(w_qkv_ref[...], xn,
                      preferred_element_type=jnp.float32) + b_qkv_ref[...]   # (3c, s) f32

        # ---- multi-head attention, transpose-free dot_generals, heads unrolled ----
        for h in range(n_head):
            q = qkv[h * d:(h + 1) * d, :].astype(jnp.bfloat16)              # (d, s)
            k = qkv[c + h * d:c + (h + 1) * d, :].astype(jnp.bfloat16)      # (d, s)
            v = qkv[2 * c + h * d:2 * c + (h + 1) * d, :].astype(jnp.bfloat16)

            # scores[i, j] = sum_d q[d, i] * k[d, j]   (q^T k, no explicit .T)
            scores = lax.dot_general(q, k, (((0,), (0,)), ((), ())),
                                     preferred_element_type=jnp.float32)     # (s, s)
            m = jnp.max(scores, axis=-1, keepdims=True)
            p = jnp.exp(scores - m)
            l = jnp.sum(p, axis=-1, keepdims=True)
            att = (p * pl.reciprocal(l, approx=True)).astype(jnp.bfloat16)
            # y_h[d, i] = sum_j v[d, j] * att[i, j]  -> already in (d, s) layout
            y_h = lax.dot_general(v, att, (((1,), (1,)), ((), ())),
                                  preferred_element_type=jnp.float32)        # (d, s)
            y_ref[h * d:(h + 1) * d, :] = y_h

        # ---- out_proj: Conv1d(c, c, 1) + residual (dropout_rate=0 -> identity) ----
        out = jnp.dot(w_out_ref[...], y_ref[...].astype(jnp.bfloat16),
                      preferred_element_type=jnp.float32) + b_out_ref[...]
        o_ref[0] = x + out

    return kernel


def self_attention_1d(x, gn_w, gn_b, w_qkv, b_qkv, w_out, b_out, *, n_head=1):
    """x: (n, c, s) float32. Weights: gn_w/gn_b (c,), w_qkv (3c, c), b_qkv (3c,),
    w_out (c, c), b_out (c,). Returns (n, c, s) float32."""
    n, c, s = x.shape
    assert c % n_head == 0
    d = c // n_head

    x = x.astype(jnp.float32)

    # Fold d**-0.25 scaling of q and k into the projection weights/bias (one-time transform).
    scale = float(d) ** (-0.25)
    row_scale = jnp.concatenate([jnp.full((2 * c,), scale, jnp.float32),
                                 jnp.ones((c,), jnp.float32)])
    w_qkv_s = (w_qkv.astype(jnp.float32) * row_scale[:, None]).astype(jnp.bfloat16)
    b_qkv_s = (b_qkv.astype(jnp.float32) * row_scale).reshape(3 * c, 1)

    gn_w2 = gn_w.reshape(c, 1).astype(jnp.float32)
    gn_b2 = gn_b.reshape(c, 1).astype(jnp.float32)
    w_out_b = w_out.astype(jnp.bfloat16)
    b_out2 = b_out.reshape(c, 1).astype(jnp.float32)

    kernel = _make_kernel(n_head)
    full = lambda shape: pl.BlockSpec(shape, lambda b: (0,) * len(shape))

    # Advisory cost estimate so XLA schedules neighbours / pipelining sensibly.
    flops = int(n * (2 * (3 * c) * c * s + n_head * 4 * s * s * d + 2 * c * c * s))
    transcendentals = int(n * n_head * s * s)
    bytes_accessed = int(4 * 2 * n * c * s + 2 * (3 * c * c + c * c) + 4 * 6 * c)
    cost = pl.CostEstimate(flops=flops, transcendentals=transcendentals,
                           bytes_accessed=bytes_accessed)

    # Rough per-step VMEM working set; raise the scoped limit only when needed, cap at 96 MiB.
    vmem_est = (4 * 4 * c * s          # x + out blocks, double-buffered, f32
                + 2 * 4 * c * c        # bf16 qkv/out weights
                + 4 * 6 * c            # f32 biases / affine
                + 4 * c * s            # y scratch
                + 4 * 3 * c * s        # qkv activations
                + 2 * 4 * s * s)       # score + prob tiles (one head live at a time)
    vmem_limit = None
    if vmem_est > 24 * 1024 * 1024:
        vmem_limit = int(min(2 * vmem_est, 96 * 1024 * 1024))

    return pl.pallas_call(
        kernel,
        out_shape=jax.ShapeDtypeStruct((n, c, s), jnp.float32),
        grid_spec=pltpu.PrefetchScalarGridSpec(
            num_scalar_prefetch=0,
            grid=(n,),
            in_specs=[
                pl.BlockSpec((1, c, s), lambda b: (b, 0, 0)),   # x
                full((c, 1)),                                    # gn weight
                full((c, 1)),                                    # gn bias
                full((3 * c, c)),                                # w_qkv (bf16, scale folded)
                full((3 * c, 1)),                                # b_qkv (f32, scale folded)
                full((c, c)),                                    # w_out (bf16)
                full((c, 1)),                                    # b_out (f32)
            ],
            out_specs=pl.BlockSpec((1, c, s), lambda b: (b, 0, 0)),
            scratch_shapes=[pltpu.VMEM((c, s), jnp.float32)],    # per-head y accumulator
        ),
        compiler_params=pltpu.CompilerParams(
            dimension_semantics=("parallel",),
            vmem_limit_bytes=vmem_limit),
        cost_estimate=cost,
    )(x, gn_w2, gn_b2, w_qkv_s, b_qkv_s, w_out_b, b_out2)


def _reference(x, gn_w, gn_b, w_qkv, b_qkv, w_out, b_out, n_head, eps=1e-5):
    n, c, s = x.shape
    d = c // n_head
    mean = jnp.mean(x, axis=(1, 2), keepdims=True)
    var = jnp.var(x, axis=(1, 2), keepdims=True)
    xn = (x - mean) / jnp.sqrt(var + eps)
    xn = xn * gn_w[None, :, None] + gn_b[None, :, None]
    qkv = jnp.einsum('oc,ncs->nos', w_qkv, xn) + b_qkv[None, :, None]  # (n, 3c, s)
    qkv = qkv.reshape(n, n_head * 3, d, s).transpose(0, 1, 3, 2)       # (n, 3h, s, d)
    q, k, v = jnp.split(qkv, 3, axis=1)
    scale = d ** (-0.25)
    att = jax.nn.softmax((q * scale) @ (jnp.swapaxes(k, 2, 3) * scale), axis=3)
    y = (att @ v).transpose(0, 1, 3, 2).reshape(n, c, s)
    out = jnp.einsum('oc,ncs->nos', w_out, y) + b_out[None, :, None]
    return x + out


if __name__ == "__main__":
    n, c, s, n_head = 2, 16, 128, 2
    key = jax.random.PRNGKey(0)
    kx, k1, k2, k3, k4, k5, k6 = jax.random.split(key, 7)

    x = jax.random.normal(kx, (n, c, s), jnp.float32)
    gn_w = 1.0 + 0.1 * jax.random.normal(k1, (c,), jnp.float32)
    gn_b = 0.1 * jax.random.normal(k2, (c,), jnp.float32)
    w_qkv = 0.2 * jax.random.normal(k3, (3 * c, c), jnp.float32)
    b_qkv = 0.1 * jax.random.normal(k4, (3 * c,), jnp.float32)
    w_out = 0.2 * jax.random.normal(k5, (c, c), jnp.float32)
    b_out = 0.1 * jax.random.normal(k6, (c,), jnp.float32)

    out = self_attention_1d(x, gn_w, gn_b, w_qkv, b_qkv, w_out, b_out, n_head=n_head)
    out = jax.block_until_ready(out)

    ref = _reference(x, gn_w, gn_b, w_qkv, b_qkv, w_out, b_out, n_head)
    max_err = float(jnp.max(jnp.abs(out - ref)))
    # bf16 MXU operands + approx reciprocal -> relaxed tolerance vs f32 reference
    assert jnp.allclose(out, ref, atol=5e-2, rtol=5e-2), f"mismatch vs reference (max abs err {max_err})"

    print("KERNEL_OK")
</pallas_src>

<mosaic_0001>
module attributes {stable_mosaic.version = 11 : i64} {
  func.func @kernel(%arg0: i32, %arg1: memref<1x16x128xf32, #tpu.memory_space<vmem>>, %arg2: memref<16x1xf32, #tpu.memory_space<vmem>>, %arg3: memref<16x1xf32, #tpu.memory_space<vmem>>, %arg4: memref<48x16xbf16, #tpu.memory_space<vmem>>, %arg5: memref<48x1xf32, #tpu.memory_space<vmem>>, %arg6: memref<16x16xbf16, #tpu.memory_space<vmem>>, %arg7: memref<16x1xf32, #tpu.memory_space<vmem>>, %arg8: memref<1x16x128xf32, #tpu.memory_space<vmem>>, %arg9: memref<16x128xf32, #tpu.memory_space<vmem>>) attributes {dimension_semantics = [#tpu.dimension_semantics<parallel>], iteration_bounds = array<i64: 2>, scalar_prefetch = 0 : i64, scratch_operands = 1 : i64, tpu.core_type = #tpu.core_type<tc>, window_params = [{transform_indices = @transform_0, window_bounds = array<i64: 1, 16, 128>}, {pipeline_mode = #tpu.pipeline_mode<synchronous>, transform_indices = @transform_1, window_bounds = array<i64: 16, 1>}, {pipeline_mode = #tpu.pipeline_mode<synchronous>, transform_indices = @transform_2, window_bounds = array<i64: 16, 1>}, {pipeline_mode = #tpu.pipeline_mode<synchronous>, transform_indices = @transform_3, window_bounds = array<i64: 48, 16>}, {pipeline_mode = #tpu.pipeline_mode<synchronous>, transform_indices = @transform_4, window_bounds = array<i64: 48, 1>}, {pipeline_mode = #tpu.pipeline_mode<synchronous>, transform_indices = @transform_5, window_bounds = array<i64: 16, 16>}, {pipeline_mode = #tpu.pipeline_mode<synchronous>, transform_indices = @transform_6, window_bounds = array<i64: 16, 1>}, {transform_indices = @transform_7, window_bounds = array<i64: 1, 16, 128>}]} {
    %c0 = arith.constant 0 : index
    %c0_0 = arith.constant 0 : index
    %c0_1 = arith.constant 0 : index
    %0 = vector.load %arg1[%c0, %c0_0, %c0_1] : memref<1x16x128xf32, #tpu.memory_space<vmem>>, vector<1x16x128xf32>
    %1 = vector.shape_cast %0 : vector<1x16x128xf32> to vector<16x128xf32>
    %2 = vector.shape_cast %1 : vector<16x128xf32> to vector<1x16x128xf32>
    %cst = arith.constant dense<0.000000e+00> : vector<1xf32>
    %3 = vector.multi_reduction <add>, %2, %cst [1, 2] : vector<1x16x128xf32> to vector<1xf32>
    %4 = vector.shape_cast %3 : vector<1xf32> to vector<1x1x1xf32>
    %5 = vector.extract %4[0, 0, 0] : f32 from vector<1x1x1xf32>
    %6 = arith.mulf %1, %1 : vector<16x128xf32>
    %7 = vector.shape_cast %6 : vector<16x128xf32> to vector<1x16x128xf32>
    %cst_2 = arith.constant dense<0.000000e+00> : vector<1xf32>
    %8 = vector.multi_reduction <add>, %7, %cst_2 [1, 2] : vector<1x16x128xf32> to vector<1xf32>
    %9 = vector.shape_cast %8 : vector<1xf32> to vector<1x1x1xf32>
    %10 = vector.extract %9[0, 0, 0] : f32 from vector<1x1x1xf32>
    %cst_3 = arith.constant 4.8828125E-4 : f32
    %11 = arith.mulf %5, %cst_3 : f32
    %cst_4 = arith.constant 4.8828125E-4 : f32
    %12 = arith.mulf %10, %cst_4 : f32
    %13 = arith.mulf %11, %11 : f32
    %14 = arith.subf %12, %13 : f32
    %cst_5 = arith.constant 9.99999974E-6 : f32
    %15 = arith.addf %14, %cst_5 : f32
    %16 = math.rsqrt %15 : f32
    %c0_6 = arith.constant 0 : index
    %c0_7 = arith.constant 0 : index
    %17 = vector.load %arg2[%c0_6, %c0_7] : memref<16x1xf32, #tpu.memory_space<vmem>>, vector<16x1xf32>
    %18 = vector.broadcast %16 : f32 to vector<16x1xf32>
    %19 = arith.mulf %17, %18 : vector<16x1xf32>
    %c0_8 = arith.constant 0 : index
    %c0_9 = arith.constant 0 : index
    %20 = vector.load %arg3[%c0_8, %c0_9] : memref<16x1xf32, #tpu.memory_space<vmem>>, vector<16x1xf32>
    %21 = vector.broadcast %11 : f32 to vector<16x1xf32>
    %22 = arith.mulf %21, %19 : vector<16x1xf32>
    %23 = arith.subf %20, %22 : vector<16x1xf32>
    %24 = vector.broadcast %19 : vector<16x1xf32> to vector<16x128xf32>
    %25 = arith.mulf %1, %24 : vector<16x128xf32>
    %26 = vector.broadcast %23 : vector<16x1xf32> to vector<16x128xf32>
    %27 = arith.addf %25, %26 : vector<16x128xf32>
    %28 = arith.truncf %27 : vector<16x128xf32> to vector<16x128xbf16>
    %c0_10 = arith.constant 0 : index
    %c0_11 = arith.constant 0 : index
    %29 = vector.load %arg4[%c0_10, %c0_11] : memref<48x16xbf16, #tpu.memory_space<vmem>>, vector<48x16xbf16>
    %cst_12 = arith.constant dense<0.000000e+00> : vector<48x128xf32>
    %30 = tpu.matmul %29, %28, %cst_12 {dimension_numbers = #tpu.dot_dimension_numbers<[1], [0], [0], [1], [0, 0, 1, 1], [], []>} : vector<48x16xbf16>, vector<16x128xbf16>, vector<48x128xf32> -> vector<48x128xf32>
    %c0_13 = arith.constant 0 : index
    %c0_14 = arith.constant 0 : index
    %31 = vector.load %arg5[%c0_13, %c0_14] : memref<48x1xf32, #tpu.memory_space<vmem>>, vector<48x1xf32>
    %32 = vector.broadcast %31 : vector<48x1xf32> to vector<48x128xf32>
    %33 = arith.addf %30, %32 : vector<48x128xf32>
    %34 = vector.extract_strided_slice %33 {offsets = [0, 0], sizes = [8, 128], strides = [1, 1]} : vector<48x128xf32> to vector<8x128xf32>
    %35 = arith.truncf %34 : vector<8x128xf32> to vector<8x128xbf16>
    %36 = vector.extract_strided_slice %33 {offsets = [16, 0], sizes = [8, 128], strides = [1, 1]} : vector<48x128xf32> to vector<8x128xf32>
    %37 = arith.truncf %36 : vector<8x128xf32> to vector<8x128xbf16>
    %38 = vector.extract_strided_slice %33 {offsets = [32, 0], sizes = [8, 128], strides = [1, 1]} : vector<48x128xf32> to vector<8x128xf32>
    %39 = arith.truncf %38 : vector<8x128xf32> to vector<8x128xbf16>
    %cst_15 = arith.constant dense<0.000000e+00> : vector<128x128xf32>
    %40 = tpu.matmul %35, %37, %cst_15 {dimension_numbers = #tpu.dot_dimension_numbers<[0], [0], [1], [1], [0, 1, 1, 1], [], []>} : vector<8x128xbf16>, vector<8x128xbf16>, vector<128x128xf32> -> vector<128x128xf32>
    %cst_16 = arith.constant dense<0xFF800000> : vector<128xf32>
    %41 = vector.multi_reduction <maximumf>, %40, %cst_16 [1] : vector<128x128xf32> to vector<128xf32>
    %42 = vector.shape_cast %41 : vector<128xf32> to vector<128x1xf32>
    %43 = vector.broadcast %42 : vector<128x1xf32> to vector<128x128xf32>
    %44 = arith.subf %40, %43 : vector<128x128xf32>
    %45 = math.exp %44 : vector<128x128xf32>
    %cst_17 = arith.constant dense<0.000000e+00> : vector<128xf32>
    %46 = vector.multi_reduction <add>, %45, %cst_17 [1] : vector<128x128xf32> to vector<128xf32>
    %47 = vector.shape_cast %46 : vector<128xf32> to vector<128x1xf32>
    %48 = tpu.reciprocal %47 {approx = true} : vector<128x1xf32> -> vector<128x1xf32>
    %49 = vector.broadcast %48 : vector<128x1xf32> to vector<128x128xf32>
    %50 = arith.mulf %45, %49 : vector<128x128xf32>
    %51 = arith.truncf %50 : vector<128x128xf32> to vector<128x128xbf16>
    %cst_18 = arith.constant dense<0.000000e+00> : vector<8x128xf32>
    %52 = tpu.matmul %39, %51, %cst_18 {dimension_numbers = #tpu.dot_dimension_numbers<[1], [1], [0], [0], [0, 0, 1, 0], [], []>} : vector<8x128xbf16>, vector<128x128xbf16>, vector<8x128xf32> -> vector<8x128xf32>
    %c0_19 = arith.constant 0 : index
    %c0_20 = arith.constant 0 : index
    %53 = vector.load %arg9[%c0_19, %c0_20] : memref<16x128xf32, #tpu.memory_space<vmem>>, vector<8x128xf32>
    tpu.vector_store %arg9[%c0_19, %c0_20], %52 {strides = array<i32>} : memref<16x128xf32, #tpu.memory_space<vmem>>, vector<8x128xf32>,
    %54 = vector.extract_strided_slice %33 {offsets = [8, 0], sizes = [8, 128], strides = [1, 1]} : vector<48x128xf32> to vector<8x128xf32>
    %55 = arith.truncf %54 : vector<8x128xf32> to vector<8x128xbf16>
    %56 = vector.extract_strided_slice %33 {offsets = [24, 0], sizes = [8, 128], strides = [1, 1]} : vector<48x128xf32> to vector<8x128xf32>
    %57 = arith.truncf %56 : vector<8x128xf32> to vector<8x128xbf16>
    %58 = vector.extract_strided_slice %33 {offsets = [40, 0], sizes = [8, 128], strides = [1, 1]} : vector<48x128xf32> to vector<8x128xf32>
    %59 = arith.truncf %58 : vector<8x128xf32> to vector<8x128xbf16>
    %cst_21 = arith.constant dense<0.000000e+00> : vector<128x128xf32>
    %60 = tpu.matmul %55, %57, %cst_21 {dimension_numbers = #tpu.dot_dimension_numbers<[0], [0], [1], [1], [0, 1, 1, 1], [], []>} : vector<8x128xbf16>, vector<8x128xbf16>, vector<128x128xf32> -> vector<128x128xf32>
    %cst_22 = arith.constant dense<0xFF800000> : vector<128xf32>
    %61 = vector.multi_reduction <maximumf>, %60, %cst_22 [1] : vector<128x128xf32> to vector<128xf32>
    %62 = vector.shape_cast %61 : vector<128xf32> to vector<128x1xf32>
    %63 = vector.broadcast %62 : vector<128x1xf32> to vector<128x128xf32>
    %64 = arith.subf %60, %63 : vector<128x128xf32>
    %65 = math.exp %64 : vector<128x128xf32>
    %cst_23 = arith.constant dense<0.000000e+00> : vector<128xf32>
    %66 = vector.multi_reduction <add>, %65, %cst_23 [1] : vector<128x128xf32> to vector<128xf32>
    %67 = vector.shape_cast %66 : vector<128xf32> to vector<128x1xf32>
    %68 = tpu.reciprocal %67 {approx = true} : vector<128x1xf32> -> vector<128x1xf32>
    %69 = vector.broadcast %68 : vector<128x1xf32> to vector<128x128xf32>
    %70 = arith.mulf %65, %69 : vector<128x128xf32>
    %71 = arith.truncf %70 : vector<128x128xf32> to vector<128x128xbf16>
    %cst_24 = arith.constant dense<0.000000e+00> : vector<8x128xf32>
    %72 = tpu.matmul %59, %71, %cst_24 {dimension_numbers = #tpu.dot_dimension_numbers<[1], [1], [0], [0], [0, 0, 1, 0], [], []>} : vector<8x128xbf16>, vector<128x128xbf16>, vector<8x128xf32> -> vector<8x128xf32>
    %c8 = arith.constant 8 : index
    %c0_25 = arith.constant 0 : index
    %73 = vector.load %arg9[%c8, %c0_25] : memref<16x128xf32, #tpu.memory_space<vmem>>, vector<8x128xf32>
    tpu.vector_store %arg9[%c8, %c0_25], %72 {strides = array<i32>} : memref<16x128xf32, #tpu.memory_space<vmem>>, vector<8x128xf32>,
    %c0_26 = arith.constant 0 : index
    %c0_27 = arith.constant 0 : index
    %74 = vector.load %arg6[%c0_26, %c0_27] : memref<16x16xbf16, #tpu.memory_space<vmem>>, vector<16x16xbf16>
    %c0_28 = arith.constant 0 : index
    %c0_29 = arith.constant 0 : index
    %75 = vector.load %arg9[%c0_28, %c0_29] : memref<16x128xf32, #tpu.memory_space<vmem>>, vector<16x128xf32>
    %76 = arith.truncf %75 : vector<16x128xf32> to vector<16x128xbf16>
    %cst_30 = arith.constant dense<0.000000e+00> : vector<16x128xf32>
    %77 = tpu.matmul %74, %76, %cst_30 {dimension_numbers = #tpu.dot_dimension_numbers<[1], [0], [0], [1], [0, 0, 1, 1], [], []>} : vector<16x16xbf16>, vector<16x128xbf16>, vector<16x128xf32> -> vector<16x128xf32>
    %c0_31 = arith.constant 0 : index
    %c0_32 = arith.constant 0 : index
    %78 = vector.load %arg7[%c0_31, %c0_32] : memref<16x1xf32, #tpu.memory_space<vmem>>, vector<16x1xf32>
    %79 = vector.broadcast %78 : vector<16x1xf32> to vector<16x128xf32>
    %80 = arith.addf %77, %79 : vector<16x128xf32>
    %81 = arith.addf %1, %80 : vector<16x128xf32>
    %c0_33 = arith.constant 0 : index
    %c0_34 = arith.constant 0 : index
    %c0_35 = arith.constant 0 : index
    %82 = vector.load %arg8[%c0_33, %c0_34, %c0_35] : memref<1x16x128xf32, #tpu.memory_space<vmem>>, vector<1x16x128xf32>
    %83 = vector.shape_cast %82 : vector<1x16x128xf32> to vector<16x128xf32>
    %84 = vector.shape_cast %81 : vector<16x128xf32> to vector<1x16x128xf32>
    tpu.vector_store %arg8[%c0_33, %c0_34, %c0_35], %84 {strides = array<i32>} : memref<1x16x128xf32, #tpu.memory_space<vmem>>, vector<1x16x128xf32>,
    return
  }
  func.func @transform_0(%arg0: i32) -> (i32, i32, i32) {
    %c0_i32 = arith.constant 0 : i32
    %c0_i32_0 = arith.constant 0 : i32
    %c0_i32_1 = arith.constant 0 : i32
    return %arg0, %c0_i32, %c0_i32_0 : i32, i32, i32
  }
  func.func @transform_1(%arg0: i32) -> (i32, i32) {
    %c0_i32 = arith.constant 0 : i32
    %c0_i32_0 = arith.constant 0 : i32
    %c0_i32_1 = arith.constant 0 : i32
    return %c0_i32, %c0_i32_0 : i32, i32
  }
  func.func @transform_2(%arg0: i32) -> (i32, i32) {
    %c0_i32 = arith.constant 0 : i32
    %c0_i32_0 = arith.constant 0 : i32
    %c0_i32_1 = arith.constant 0 : i32
    return %c0_i32, %c0_i32_0 : i32, i32
  }
  func.func @transform_3(%arg0: i32) -> (i32, i32) {
    %c0_i32 = arith.constant 0 : i32
    %c0_i32_0 = arith.constant 0 : i32
    %c0_i32_1 = arith.constant 0 : i32
    return %c0_i32, %c0_i32_0 : i32, i32
  }
  func.func @transform_4(%arg0: i32) -> (i32, i32) {
    %c0_i32 = arith.constant 0 : i32
    %c0_i32_0 = arith.constant 0 : i32
    %c0_i32_1 = arith.constant 0 : i32
    return %c0_i32, %c0_i32_0 : i32, i32
  }
  func.func @transform_5(%arg0: i32) -> (i32, i32) {
    %c0_i32 = arith.constant 0 : i32
    %c0_i32_0 = arith.constant 0 : i32
    %c0_i32_1 = arith.constant 0 : i32
    return %c0_i32, %c0_i32_0 : i32, i32
  }
  func.func @transform_6(%arg0: i32) -> (i32, i32) {
    %c0_i32 = arith.constant 0 : i32
    %c0_i32_0 = arith.constant 0 : i32
    %c0_i32_1 = arith.constant 0 : i32
    return %c0_i32, %c0_i32_0 : i32, i32
  }
  func.func @transform_7(%arg0: i32) -> (i32, i32, i32) {
    %c0_i32 = arith.constant 0 : i32
    %c0_i32_0 = arith.constant 0 : i32
    %c0_i32_1 = arith.constant 0 : i32
    return %arg0, %c0_i32, %c0_i32_0 : i32, i32, i32
  }
}

</mosaic_0001>

<bundles_post_ra>
// kernel: tpu_custom_call.1
= control target key start
LH: loop header
LB: loop body
LE: loop exit
PB: predicated region body
PF: predicated region fallthrough
CT: control target
= control target key end

     0   :  { %12 = vsyncpa [#allocation4], 0  ;;  %s2251_s0 = inlined_call_operand.vmem [shape: f32[2,16,128], index: 0, kind: input, shape index: {}]   ;;  %s2252_s1 = inlined_call_operand.vmem [shape: f32[16,1], index: 1, kind: input, shape index: {}]   ;;  %s2253_s2 = inlined_call_operand.vmem [shape: f32[16,1], index: 2, kind: input, shape index: {}]   ;;  %s2254_s3 = inlined_call_operand.vmem [shape: bf16[48,16], index: 3, kind: input, shape index: {}]   ;;  %s2255_s4 = inlined_call_operand.vmem [shape: f32[48,1], index: 4, kind: input, shape index: {}]   ;;  %s2256_s5 = inlined_call_operand.vmem [shape: bf16[16,16], index: 5, kind: input, shape index: {}]   ;;  %s2257_s6 = inlined_call_operand.vmem [shape: f32[16,1], index: 6, kind: input, shape index: {}]   ;;  %s2258_s7 = inlined_call_operand.hbm [shape: f32[2,16,128], index: 7, kind: output, shape index: {}]  }
   0x1   :  { %14 = vsyncpa [#allocation4 + $0x1], 0  ;;  %s1767_s24 = smov 0   ;;  %s1769_s25 = smov 0  }
   0x2   :  { %s1771_s26 = smov 0   ;;  %s1773_s27 = smov 0  }
   0x3 LB: > { %s1788_s28 = sadd.s32 4294967295, %s1719_s27   ;;  %s1291_s29 = sadd.s32 4294967294, %s1719_s27   ;;  %s1719_s27 = sphi %s1773_s27, %s2264_s27   ;;  %s1715_s26 = sphi %s1771_s26, %s2263_s26   ;;  %s1711_s25 = sphi %s1769_s25, %s2262_s25   ;;  %s1707_s24 = sphi %s1767_s24, %s2261_s24  }
   0x4   : > { %s1792_s30 = sadd.s32 1, %s1719_s27   ;;  %s179_s8 = sadd.s32 1, %s1715_s26 }
   0x5   : > { %s176_s9 = ssub.s32 %s1719_s27, %s1792_s30  ;;  %p189_p0 = scmp.ne.s32.totalorder %s1715_s26, %s1711_s25 }
   0x6   : > { %p177_p1 = scmp.eq.s32.totalorder %s176_s9, 0  ;;  %p190_p2 = scmp.eq.s32.totalorder %s1788_s28, 1 }
   0x7   : > { %p195_p3 = scmp.ne.s32.totalorder %s1711_s25, %s1707_s24  ;;  %p196_p4 = scmp.eq.s32.totalorder %s1291_s29, 1 }
   0x8   : > { %s1803_s10 = scalar_select %p177_p1, %s1715_s26, %s179_s8  }
   0x9   : > { %p1805_p5 = por %p190_p2, %p189_p0  ;;  %p1809_p6 = por %p196_p4, %p195_p3 }
   0xa   : > { %p1294_p7 = scmp.ge.s32.totalorder %s1719_s27, 1  ;;  %p240_p8 = scmp.lt.s32.totalorder %s1719_s27, 3 }
   0xc   : > { %p241_p9 = pnand %p1294_p7, %p240_p8 }
   0xd   : > { %p272_p10 = scmp.lt.s32.totalorder (!%p241_p9), %s1788_s28, 1  ;;  %v1721_v16 = vmov (!%p241_p9), 0   ;;  %v310_v23 = vld [vmem:[%s2252_s1] sm:$0xff] (!%p241_p9)  ;;  %v311_v24 = vld [vmem:[%s2252_s1 + $0x8] sm:$0xff] (!%p241_p9)  ;;  %v1722_v36 = vmov (!%p241_p9), 0.0   ;;  %vm1723_vm0 = vmmov (!%p241_p9), 0  }
   0xe   : > { %244 = sbr.rel (%p241_p9) target bundleno = 1862 (0x746), region = 48  ;;  %1519 = vset.pattern.permute.xlu1 (!%p241_p9), %v1721_v16  ;;  %1520 = vset.pattern.permute.xlu0 (!%p241_p9), %v1721_v16  ;;  %v315_v29 = vld [vmem:[%s2253_s2] sm:$0xff] (!%p241_p9)  ;;  %v316_v33 = vld [vmem:[%s2253_s2 + $0x8] sm:$0xff] (!%p241_p9)  ;;  %v355_v38 = vld [vmem:[%s2255_s4 + $0x10] sm:$0xff] (!%p241_p9)  ;;  %vm404_vm1 = vcmask (!%p241_p9), 130048   ;;  %vm515_vm2 = vcmask (!%p241_p9), 1043456  }
   0xf   : > { %v353_v35 = vld [vmem:[%s2255_s4] sm:$0xff] (!%p241_p9)  ;;  %1371 = vmatprep.subr.bf16.mxu0 (!%p241_p9), %v1722_v36  ;;  %v354_v37 = vld [vmem:[%s2255_s4 + $0x8] sm:$0xff] (!%p241_p9)  ;;  %1373 = vmatprep.mubr.msk.bf16.mxu0 (!%p241_p9), %vm1723_vm0, %v1722_v36  ;;  %v356_v39 = vld [vmem:[%s2255_s4 + $0x18] sm:$0xff] (!%p241_p9)  ;;  %vm490_vm3 = vcmask (!%p241_p9), 64512  }
  0x10   : > { %v1521_v49 = vld [vmem:[%s2254_s3] sm:$0xff] (!%p241_p9)   ;;  %v1522_v50 = vld [vmem:[%s2254_s3 + $0x8] sm:$0xff] (!%p241_p9)  }
  0x15   : > { %s273_s13 = scalar_select %p272_p10, %s1788_s28, 1 }
  0x17   : > { %s1327_s14 = sshll.u32 %s273_s13, 4 }
  0x18   : > { %s1820_s17 = scalar_lea.vmem %s2251_s0, %s1327_s14  ;;  %s1724_s14 = smov [#allocation3]  }
  0x19   : > { %v1823_v0 = vld [vmem:[%s1820_s17] sm:$0xff]  ;;  %v1826_v1 = vld [vmem:[%s1820_s17 + $0x8] sm:$0xff] }
  0x1a   : > { %v280_v2 = vadd.f32 %v1826_v1, %v1823_v0  ;;  %v290_v3 = vmul.f32 %v1823_v0, %v1823_v0  ;;  %v291_v4 = vmul.f32 %v1826_v1, %v1826_v1 }
  0x1c   : > { %281 = vadd.xlane.f32.xlu0 %v280_v2  ;;  %v292_v5 = vadd.f32 %v291_v4, %v290_v3 }
  0x20   : > { %293 = vadd.xlane.f32.xlu0 %v292_v5 }
  0xa9   : > { %v282_v6 = vpop.xlane.xlu0 %281 }
  0xaa   : > { %v283_v7 = vrot.slane %v282_v6, 4 }
  0xac   : > { %v284_v8 = vadd.f32 %v283_v7, %v282_v6 }
  0xad   : > { %v294_v9 = vpop.xlane.xlu0 %293 }
  0xae   : > { %v285_v10 = vrot.slane %v284_v8, 2  ;;  %v295_v11 = vrot.slane %v294_v9, 4 }
  0xb0   : > { %v296_v12 = vadd.f32 %v295_v11, %v294_v9  ;;  %v286_v13 = vadd.f32 %v285_v10, %v284_v8 }
  0xb2   : > { %v297_v14 = vrot.slane %v296_v12, 2  ;;  %v287_v15 = vrot.slane %v286_v13, 1 }
  0xb4   : > { %v288_v17 = vadd.f32 %v287_v15, %v286_v13  ;;  %v298_v18 = vadd.f32 %v297_v14, %v296_v12 }
  0xb6   : > { %1469 = vpush %v288_v17  ;;  %v299_v19 = vrot.slane %v298_v18, 1 }
  0xb8   : > { %v300_v20 = vadd.f32 %v299_v19, %v298_v18 }
  0xba   : > { %1471 = vpush %v300_v20 }
  0xe7   : > { %s1470_s18 = spop %1469 }
  0xe8   : > { %s302_s19 = smul.f32 0.00048828125, %s1470_s18 }
  0xea   : > { %s304_s20 = smul.f32 %s302_s19, %s302_s19  ;;  %v317_v28 = vstv %s302_s19  ;;  %s1328_s19 = sshll.u32 %s1788_s28, 8 }
  0xeb   : > { %s1472_s21 = spop %1471  ;;  %s2207_s9 = scalar_lea.hbm %s2258_s7, %s1328_s19 }
  0xec   : > { %s303_s22 = smul.f32 0.00048828125, %s1472_s21 }
  0xee   : > { %s305_s23 = ssub.f32 %s303_s22, %s304_s20  ;;  %s269_s20 = sand.u32 1, %s1711_s25  }
  0xef   : > { %s1295_s21 = sshll.u32 %s269_s20, 4  ;;  %s2210_s28 = scalar_lea.sflag [#allocation4], %s269_s20 }
  0xf0   : > { %s306_s29 = sadd.f32 1e-05, %s305_s23  ;;  %s271_s22 = scalar_lea.vmem [#allocation3], %s1295_s21 }
  0xf1   : > { %s1229_s23 = sshll.u32 %s271_s22, 4  ;;  %s2202_s23 = int_to_ptr.vmem [resolvable:$true] %s1229_s23 }
  0xf2   : > { %v307_v21 = vstv %s306_s29  ;;  %s1657_s13 = scalar_lea.vmem %s2202_s23, 256 }
  0xf3   : > { %1525 = vrsqrt.f32 %v307_v21  ;;  %p1658_p11 = scmp.ne.s32.totalorder %s2202_s23, %s1657_s13 }
  0xf5   : > { %p1659_p12 = pnand %p1658_p11, %p1805_p5 }
  0xf7   : > { %p1660_p13 = pneg %p1659_p12 }
  0xfd   : > { %v1526_v22 = vpop.eup %1525 }
  0xfe   : > { %1473 = vpush %v1526_v22 }
 0x12f   : > { %s1474_s15 = spop %1473 }
 0x130   : > { %v312_v25 = vstv %s1474_s15  ;;  %s1661_s15 = sshll.u32 %s1724_s14, 4  ;;  %s1662_s15 = int_to_ptr.vmem [resolvable:$false] %s1661_s15 }
 0x131   : > { %v313_v26 = vmul.f32 %v312_v25, %v310_v23  ;;  %v314_v27 = vmul.f32 %v312_v25, %v311_v24  ;;  %s1663_s16 = scalar_lea.vmem %s1662_s15, 512  ;;  %p1664_p0 = scmp.lt.s32.totalorder %s2202_s23, %s1662_s15 }
 0x132   : > { %p1665_p1 = scmp.lt.s32.totalorder %s1663_s16, %s1657_s13 }
 0x133   : > { %v318_v30 = vmul.f32 %v317_v28, %v313_v26  ;;  %324 = vperm.xlu1 %1519, %v313_v26   ;;  %v319_v31 = vmul.f32 %v317_v28, %v314_v27 }
 0x134   : > { %p1666_p2 = por %p1665_p1, %p1664_p0 }
 0x135   : > { %v320_v32 = vsub.f32 %v315_v29, %v318_v30  ;;  %v321_v34 = vsub.f32 %v316_v33, %v319_v31 }
 0x136   : > { %p1667_p3 = pnand %p1666_p2, %p1660_p13 }
 0x137   : > { %329 = vperm.xlu1 %1519, %v314_v27   ;;  %336 = vperm.xlu0 %1520, %v320_v32  }
 0x13b   : > { %341 = vperm.xlu1 %1519, %v321_v34  }
 0x13f   : > { %361 = vperm.xlu1 %1519, %v353_v35  }
 0x143   : > { %366 = vperm.xlu1 %1519, %v354_v37  }
 0x147   : > { %371 = vperm.xlu1 %1519, %v355_v38  }
 0x14b   : > { %376 = vperm.xlu1 %1519, %v356_v39  }
 0x1b2   : > { %v325_v40 = vpop.permute.xlu1 %324 }
 0x1b3   : > { %v332_v43 = vmul.f32 %v325_v40, %v1823_v0 }
 0x1b6   : > { %v330_v41 = vpop.permute.xlu1 %329  ;;  %v337_v42 = vpop.permute.xlu0 %336 }
 0x1b7   : > { %v333_v44 = vmul.f32 %v330_v41, %v1826_v1  ;;  %v344_v46 = vadd.f32 %v337_v42, %v332_v43 }
 0x1ba   : > { %v342_v45 = vpop.permute.xlu1 %341 }
 0x1bb   : > { %v345_v47 = vadd.f32 %v342_v45, %v333_v44 }
 0x1bd   : > { %v346_v48 = vpack.c.bf16 %v345_v47, %v344_v46 }
 0x1be   : > { %v362_v51 = vpop.permute.xlu1 %361 }
 0x1bf   : > { %1372 = vmatpush3.bf16.msra.mxu0 %v346_v48 }
 0x1c0   : > { %1403 = vmatprep.subr.bf16.mxu0 %v1722_v36 }
 0x1c2   : > { %1374 = vmatmul.mubr.msk.bf16.vlgmr.msra.gmra.mrb[0].mxu0 %vm404_vm1, %v1521_v49  ;;  %v367_v52 = vpop.permute.xlu1 %366 }
 0x1c3   : > { %1377 = vmatprep.mubr.msk.bf16.mxu0 %vm1723_vm0, %v1722_v36 }
 0x1c6   : > { %v372_v60 = vpop.permute.xlu1 %371 }
 0x1ca   : > { %1378 = vmatmul.mubr.msk.bf16.gmra.mrb[4].mxu0 %vm404_vm1, %v1522_v50  ;;  %v377_v1 = vpop.permute.xlu1 %376 }
 0x1cb   : > { %1381 = vmatprep.mubr.msk.bf16.mxu0 %vm1723_vm0, %v1722_v36 }
 0x295   : > { %v448_v53 = vpop.f32.mrb[0].mxu0 }
 0x296   : > { %v449_v54 = vadd.f32 %v448_v53, %v362_v51  ;;  %v1375_v55 = vpop.f32.mrb[1].mxu0 }
 0x297   : > { %v451_v56 = vpop.f32.mrb[2].mxu0 }
 0x298   : > { %v471_v57 = vpack.c.bf16 %v449_v54, %v449_v54  ;;  %v452_v58 = vadd.f32 %v451_v56, %v367_v52  ;;  %v1376_v59 = vpop.f32.mrb[3].mxu0 }
 0x29a   : > { %v809_v61 = vpack.c.bf16 %v452_v58, %v452_v58  ;;  %474 = vxpose.xlu1.c.b16.start.end [1/1] (short) %v471_v57, 128  ;;  %v1523_v58 = vld [vmem:[%s2254_s3 + $0x10] sm:$0xff]  }
 0x29b   : > { %1382 = vmatmul.mubr.msk.bf16.gmra.mrb[8].mxu0 %vm404_vm1, %v1523_v58 }
 0x29c   : > { %812 = vxpose.xlu0.c.b16.start.end [1/1] (short) %v809_v61, 128  ;;  %1419 = vmatprep.mubr.msk.bf16.mxu0 %vm1723_vm0, %v1722_v36 }
 0x29d   : > { %v456_v62 = vpop.f32.mrb[4].mxu0 }
 0x29e   : > { %v457_v63 = vadd.f32 %v456_v62, %v372_v60  ;;  %v1379_v0 = vpop.f32.mrb[5].mxu0 }
 0x29f   : > { %v459_v2 = vpop.f32.mrb[6].mxu0 }
 0x2a0   : > { %v472_v3 = vpack.c.bf16 %v457_v63, %v457_v63  ;;  %v460_v4 = vadd.f32 %v459_v2, %v377_v1  ;;  %v1380_v5 = vpop.f32.mrb[7].mxu0 }
 0x2a2   : > { %v810_v6 = vpack.c.bf16 %v460_v4, %v460_v4  ;;  %1467 = vmatprep.subr.msk.bf16.mxu1 %vm515_vm2, %v472_v3  ;;  %v517_v7 = vsel %vm515_vm2, %v472_v3, 0 }
 0x2a3   : > { %1386 = vmatpush3.bf16.msra.mxu1 %v517_v7 }
 0x2a4   : > { %v853_v8 = vsel %vm515_vm2, %v810_v6, 0  ;;  %1468 = vmatprep.subr.msk.bf16.mxu1 %vm515_vm2, %v810_v6 }
 0x300   : > { %v482_v9 = vpop.trf.xlu1 }
 0x301   : > { %1387 = vmatprep.mubr.msk.bf16.mxu1 %vm490_vm3, %v482_v9 }
 0x302   : > { %v820_v15 = vpop.trf.xlu0 }
 0x304   : > { %v483_v10 = vpop.trf.xlu1 }
 0x305   : > { %1388 = vmatmul.mubr.msk.bf16.vlgmr.msra.gmra.mrb[0].mxu1 %vm490_vm3, %v483_v10 }
 0x306   : > { %1424 = vmatpush3.bf16.msra.mxu1 %v853_v8  ;;  %v821_v17 = vpop.trf.xlu0 }
 0x307   : > { %1441 = vmatprep.subr.bf16.mxu1 %v1722_v36 }
 0x308   : > { %v484_v11 = vpop.trf.xlu1 }
 0x309   : > { %1391 = vmatprep.mubr.msk.bf16.mxu1 %vm490_vm3, %v484_v11 }
 0x30a   : > { %v822_v19 = vpop.trf.xlu0 }
 0x30c   : > { %v485_v12 = vpop.trf.xlu1 }
 0x30d   : > { %1392 = vmatmul.mubr.msk.bf16.gmra.mrb[4].mxu1 %vm490_vm3, %v485_v12 }
 0x30e   : > { %v823_v20 = vpop.trf.xlu0 }
 0x310   : > { %v486_v13 = vpop.trf.xlu1 }
 0x311   : > { %1395 = vmatprep.mubr.msk.bf16.mxu1 %vm490_vm3, %v486_v13 }
 0x312   : > { %v824_v21 = vpop.trf.xlu0 }
 0x314   : > { %v487_v14 = vpop.trf.xlu1 }
 0x315   : > { %1396 = vmatmul.mubr.msk.bf16.gmra.mrb[8].mxu1 %vm490_vm3, %v487_v14 }
 0x316   : > { %v825_v22 = vpop.trf.xlu0 }
 0x318   : > { %v488_v16 = vpop.trf.xlu1 }
 0x319   : > { %1399 = vmatprep.mubr.msk.bf16.mxu1 %vm490_vm3, %v488_v16 }
 0x31a   : > { %v826_v23 = vpop.trf.xlu0 }
 0x31c   : > { %v489_v18 = vpop.trf.xlu1 }
 0x31d   : > { %1400 = vmatmul.mubr.msk.bf16.gmra.mrb[12].mxu1 %vm490_vm3, %v489_v18 }
 0x31e   : > { %1425 = vmatprep.mubr.msk.bf16.mxu1 %vm490_vm3, %v820_v15  ;;  %v827_v24 = vpop.trf.xlu0 }
 0x325   : > { %1426 = vmatmul.mubr.msk.bf16.vlgmr.msra.gmra.mrb[16].mxu1 %vm490_vm3, %v821_v17 }
 0x326   : > { %1429 = vmatprep.mubr.msk.bf16.mxu1 %vm490_vm3, %v822_v19 }
 0x32d   : > { %1430 = vmatmul.mubr.msk.bf16.gmra.mrb[20].mxu1 %vm490_vm3, %v823_v20 }
 0x32e   : > { %1433 = vmatprep.mubr.msk.bf16.mxu1 %vm490_vm3, %v824_v21 }
 0x335   : > { %1434 = vmatmul.mubr.msk.bf16.gmra.mrb[24].mxu1 %vm490_vm3, %v825_v22 }
 0x336   : > { %1437 = vmatprep.mubr.msk.bf16.mxu1 %vm490_vm3, %v826_v23 }
 0x33d   : > { %1438 = vmatmul.mubr.msk.bf16.gmra.mrb[28].mxu1 %vm490_vm3, %v827_v24 }
 0x33e   : > { %1457 = vmatprep.mubr.msk.bf16.mxu1 %vm1723_vm0, %v1722_v36 }
 0x3d8   : > { %v1895_v25 = vpop.f32.mrb[0].mxu1 }
 0x3d9   : > { %v1897_v26 = vpop.f32.mrb[1].mxu1 }
 0x3da   : > { %616 = vmax.xlane.f32.xlu1 %v1897_v26  ;;  %v1900_v27 = vpop.f32.mrb[2].mxu1 }
 0x3db   : > { %v1902_v28 = vpop.f32.mrb[3].mxu1 }
 0x3dc   : > { %618 = vmax.xlane.f32.xlu0 %v1902_v28 }
 0x3de   : > { %620 = vmax.xlane.f32.xlu1 %v1895_v25 }
 0x3e0   : > { %v1906_v29 = vpop.f32.mrb[4].mxu1 }
 0x3e1   : > { %v1908_v30 = vpop.f32.mrb[5].mxu1 }
 0x3e2   : > { %v1910_v31 = vpop.f32.mrb[6].mxu1 }
 0x3e3   : > { %v1912_v32 = vpop.f32.mrb[7].mxu1 }
 0x3e8   : > { %v1914_v33 = vpop.f32.mrb[8].mxu1 }
 0x3e9   : > { %v1916_v34 = vpop.f32.mrb[9].mxu1 }
 0x3ea   : > { %v1918_v35 = vpop.f32.mrb[10].mxu1 }
 0x3eb   : > { %v1920_v37 = vpop.f32.mrb[11].mxu1 }
 0x3f0   : > { %v1922_v38 = vpop.f32.mrb[12].mxu1 }
 0x3f1   : > { %v1924_v39 = vpop.f32.mrb[13].mxu1 }
 0x3f2   : > { %v1926_v40 = vpop.f32.mrb[14].mxu1 }
 0x3f3   : > { %v1928_v41 = vpop.f32.mrb[15].mxu1 }
 0x3f8   : > { %v1930_v42 = vpop.f32.mrb[16].mxu1 }
 0x3f9   : > { %v1932_v43 = vpop.f32.mrb[17].mxu1 }
 0x3fa   : > { %952 = vmax.xlane.f32.xlu1 %v1932_v43  ;;  %v1935_v44 = vpop.f32.mrb[18].mxu1 }
 0x3fb   : > { %958 = vmax.xlane.f32.xlu0 %v1935_v44  ;;  %v1938_v45 = vpop.f32.mrb[19].mxu1 }
 0x3fe   : > { %954 = vmax.xlane.f32.xlu1 %v1938_v45 }
 0x3ff   : > { %626 = vmax.xlane.f32.xlu0 %v1912_v32 }
 0x400   : > { %v1942_v46 = vpop.f32.mrb[20].mxu1 }
 0x401   : > { %v1944_v47 = vpop.f32.mrb[21].mxu1 }
 0x402   : > { %622 = vmax.xlane.f32.xlu1 %v1900_v27  ;;  %v1947_v48 = vpop.f32.mrb[22].mxu1 }
 0x403   : > { %v1949_v49 = vpop.f32.mrb[23].mxu1 }
 0x404   : > { %962 = vmax.xlane.f32.xlu0 %v1949_v49 }
 0x406   : > { %956 = vmax.xlane.f32.xlu1 %v1930_v42 }
 0x408   : > { %630 = vmax.xlane.f32.xlu0 %v1910_v31  ;;  %v1954_v50 = vpop.f32.mrb[24].mxu1 }
 0x409   : > { %v1956_v51 = vpop.f32.mrb[25].mxu1 }
 0x40a   : > { %624 = vmax.xlane.f32.xlu1 %v1908_v30  ;;  %v1959_v52 = vpop.f32.mrb[26].mxu1 }
 0x40b   : > { %v1961_v53 = vpop.f32.mrb[27].mxu1 }
 0x40c   : > { %966 = vmax.xlane.f32.xlu0 %v1947_v48 }
 0x40e   : > { %960 = vmax.xlane.f32.xlu1 %v1944_v47 }
 0x410   : > { %634 = vmax.xlane.f32.xlu0 %v1920_v37  ;;  %v1966_v54 = vpop.f32.mrb[28].mxu1 }
 0x411   : > { %v1968_v55 = vpop.f32.mrb[29].mxu1 }
 0x412   : > { %628 = vmax.xlane.f32.xlu1 %v1906_v29  ;;  %v1971_v56 = vpop.f32.mrb[30].mxu1 }
 0x413   : > { %v1973_v57 = vpop.f32.mrb[31].mxu1 }
 0x414   : > { %970 = vmax.xlane.f32.xlu0 %v1961_v53 }
 0x416   : > { %964 = vmax.xlane.f32.xlu1 %v1942_v46 }
 0x418   : > { %638 = vmax.xlane.f32.xlu0 %v1918_v35 }
 0x41a   : > { %632 = vmax.xlane.f32.xlu1 %v1916_v34 }
 0x41c   : > { %974 = vmax.xlane.f32.xlu0 %v1959_v52 }
 0x41e   : > { %968 = vmax.xlane.f32.xlu1 %v1956_v51 }
 0x420   : > { %642 = vmax.xlane.f32.xlu0 %v1928_v41 }
 0x422   : > { %636 = vmax.xlane.f32.xlu1 %v1914_v33 }
 0x424   : > { %978 = vmax.xlane.f32.xlu0 %v1973_v57 }
 0x426   : > { %972 = vmax.xlane.f32.xlu1 %v1954_v50 }
 0x428   : > { %646 = vmax.xlane.f32.xlu0 %v1926_v40 }
 0x42a   : > { %640 = vmax.xlane.f32.xlu1 %v1924_v39 }
 0x42c   : > { %982 = vmax.xlane.f32.xlu0 %v1971_v56 }
 0x42e   : > { %976 = vmax.xlane.f32.xlu1 %v1968_v55 }
 0x432   : > { %644 = vmax.xlane.f32.xlu1 %v1922_v38 }
 0x436   : > { %980 = vmax.xlane.f32.xlu1 %v1966_v54 }
 0x467   : > { %v617_v59 = vpop.xlane.xlu1 %616 }
 0x468   : > { %v648_v61 = vsub.f32 %v1897_v26, %v617_v59 }
 0x469   : > { %v619_v3 = vpop.xlane.xlu0 %618 }
 0x46a   : > { %v664_v0 = vmul.f32 1.442695, %v648_v61  ;;  %v649_v8 = vsub.f32 %v1902_v28, %v619_v3 }
 0x46b   : > { %v621_v60 = vpop.xlane.xlu1 %620 }
 0x46c   : > { %v650_v62 = vsub.f32 %v1895_v25, %v621_v60  ;;  %v666_v13 = vmul.f32 1.442695, %v649_v8 }
 0x46e   : > { %v668_v63 = vmul.f32 1.442695, %v650_v62 }
 0x470   : > { %1527 = vpow2.f32 %v668_v63 }
 0x471   : > { %1529 = vpow2.f32 %v664_v0 }
 0x47a   : > { %v1999_v1 = vpop.eup %1527 }
 0x47b   : > { %700 = vadd.xlane.f32.xlu1 %v1999_v1  ;;  %v2002_v2 = vpop.eup %1529 }
 0x47f   : > { %696 = vadd.xlane.f32.xlu1 %v2002_v2 }
 0x487   : > { %v953_v4 = vpop.xlane.xlu1 %952 }
 0x488   : > { %v959_v5 = vpop.xlane.xlu0 %958  ;;  %v984_v14 = vsub.f32 %v1932_v43, %v953_v4 }
 0x489   : > { %v987_v21 = vsub.f32 %v1935_v44, %v959_v5 }
 0x48a   : > { %v1000_v20 = vmul.f32 1.442695, %v984_v14 }
 0x48b   : > { %v955_v6 = vpop.xlane.xlu1 %954  ;;  %v1006_v26 = vmul.f32 1.442695, %v987_v21 }
 0x48c   : > { %v627_v7 = vpop.xlane.xlu0 %626  ;;  %v985_v16 = vsub.f32 %v1938_v45, %v955_v6 }
 0x48e   : > { %v1002_v23 = vmul.f32 1.442695, %v985_v16 }
 0x48f   : > { %v623_v9 = vpop.xlane.xlu1 %622 }
 0x490   : > { %v651_v10 = vsub.f32 %v1900_v27, %v623_v9  ;;  %v653_v27 = vsub.f32 %v1912_v32, %v627_v7 }
 0x491   : > { %v963_v11 = vpop.xlane.xlu0 %962 }
 0x492   : > { %v670_v12 = vmul.f32 1.442695, %v651_v10  ;;  %v674_v58 = vmul.f32 1.442695, %v653_v27  ;;  %v989_v63 = vsub.f32 %v1949_v49, %v963_v11 }
 0x493   : > { %v957_v15 = vpop.xlane.xlu1 %956 }
 0x494   : > { %1531 = vpow2.f32 %v670_v12  ;;  %v986_v17 = vsub.f32 %v1930_v42, %v957_v15  ;;  %v1010_v8 = vmul.f32 1.442695, %v989_v63 }
 0x495   : > { %v631_v18 = vpop.xlane.xlu0 %630  ;;  %1533 = vpow2.f32 %v666_v13 }
 0x496   : > { %v1004_v19 = vmul.f32 1.442695, %v986_v17  ;;  %v655_v44 = vsub.f32 %v1910_v31, %v631_v18 }
 0x497   : > { %v625_v22 = vpop.xlane.xlu1 %624 }
 0x498   : > { %1535 = vpow2.f32 %v1004_v19  ;;  %v652_v24 = vsub.f32 %v1908_v30, %v625_v22  ;;  %v678_v0 = vmul.f32 1.442695, %v655_v44 }
 0x499   : > { %v967_v25 = vpop.xlane.xlu0 %966  ;;  %1537 = vpow2.f32 %v1000_v20 }
 0x49a   : > { %1539 = vpow2.f32 %v1002_v23  ;;  %v672_v43 = vmul.f32 1.442695, %v652_v24  ;;  %v991_v49 = vsub.f32 %v1947_v48, %v967_v25 }
 0x49b   : > { %v961_v28 = vpop.xlane.xlu1 %960  ;;  %1541 = vpow2.f32 %v1006_v26 }
 0x49c   : > { %1543 = vpow2.f32 %v672_v43  ;;  %v988_v31 = vsub.f32 %v1944_v47, %v961_v28  ;;  %v1014_v13 = vmul.f32 1.442695, %v991_v49 }
 0x49d   : > { %v635_v42 = vpop.xlane.xlu0 %634  ;;  %1545 = vpow2.f32 %v674_v58 }
 0x49e   : > { %v2013_v45 = vpop.eup %1531  ;;  %v1008_v10 = vmul.f32 1.442695, %v988_v31  ;;  %v657_v14 = vsub.f32 %v1920_v37, %v635_v42 }
 0x49f   : > { %v629_v59 = vpop.xlane.xlu1 %628  ;;  %702 = vadd.xlane.f32.xlu0 %v2013_v45  ;;  %v2018_v60 = vpop.eup %1533 }
 0x4a0   : > { %v654_v30 = vsub.f32 %v1906_v29, %v629_v59 }
 0x4a1   : > { %v2020_v61 = vpop.xlane.xlu0 %970 }
 0x4a2   : > { %v2022_v32 = vpop.eup %1535  ;;  %v676_v62 = vmul.f32 1.442695, %v654_v30  ;;  %v993_v24 = vsub.f32 %v1961_v53, %v2020_v61 }
 0x4a3   : > { %v965_v3 = vpop.xlane.xlu1 %964  ;;  %1036 = vadd.xlane.f32.xlu1 %v2022_v32  ;;  %698 = vadd.xlane.f32.xlu0 %v2018_v60  ;;  %v2029_v4 = vpop.eup %1537 }
 0x4a4   : > { %1547 = vpow2.f32 %v676_v62  ;;  %v990_v29 = vsub.f32 %v1942_v46, %v965_v3  ;;  %v2031_v6 = vpop.eup %1539  ;;  %v1018_v58 = vmul.f32 1.442695, %v993_v24 }
 0x4a5   : > { %v639_v5 = vpop.xlane.xlu0 %638  ;;  %1549 = vpow2.f32 %v678_v0  ;;  %v2037_v46 = vpop.eup %1541 }
 0x4a6   : > { %v1012_v7 = vmul.f32 1.442695, %v990_v29  ;;  %v2039_v11 = vpop.eup %1543  ;;  %v659_v18 = vsub.f32 %v1918_v35, %v639_v5 }
 0x4a7   : > { %v633_v9 = vpop.xlane.xlu1 %632  ;;  %1032 = vadd.xlane.f32.xlu1 %v2029_v4  ;;  %1034 = vadd.xlane.f32.xlu0 %v2031_v6  ;;  %v2044_v16 = vpop.eup %1545 }
 0x4a8   : > { %1551 = vpow2.f32 %v1012_v7  ;;  %v656_v47 = vsub.f32 %v1916_v34, %v633_v9  ;;  %v682_v34 = vmul.f32 1.442695, %v657_v14  ;;  %v686_v25 = vmul.f32 1.442695, %v659_v18 }
 0x4a9   : > { %v975_v12 = vpop.xlane.xlu0 %974  ;;  %1553 = vpow2.f32 %v1010_v8 }
 0x4aa   : > { %1555 = vpow2.f32 %v1008_v10  ;;  %v680_v48 = vmul.f32 1.442695, %v656_v47  ;;  %v995_v53 = vsub.f32 %v1959_v52, %v975_v12 }
 0x4ab   : > { %v969_v15 = vpop.xlane.xlu1 %968  ;;  %704 = vadd.xlane.f32.xlu1 %v2039_v11  ;;  %1038 = vadd.xlane.f32.xlu0 %v2037_v46  ;;  %1557 = vpow2.f32 %v1014_v13 }
 0x4ac   : > { %1559 = vpow2.f32 %v680_v48  ;;  %v992_v26 = vsub.f32 %v1956_v51, %v969_v15  ;;  %v1022_v61 = vmul.f32 1.442695, %v995_v53 }
 0x4ad   : > { %v643_v37 = vpop.xlane.xlu0 %642  ;;  %1561 = vpow2.f32 %v682_v34 }
 0x4ae   : > { %v2046_v17 = vpop.eup %1547  ;;  %v1016_v59 = vmul.f32 1.442695, %v992_v26  ;;  %v661_v62 = vsub.f32 %v1928_v41, %v643_v37  ;;  %v1150_v26 = vld [vmem:[%s2257_s6] sm:$0xff] }
 0x4af   : > { %v637_v19 = vpop.xlane.xlu1 %636  ;;  %708 = vadd.xlane.f32.xlu1 %v2046_v17  ;;  %706 = vadd.xlane.f32.xlu0 %v2044_v16  ;;  %v2052_v21 = vpop.eup %1549 }
 0x4b0   : > { %v658_v20 = vsub.f32 %v1914_v33, %v637_v19 }
 0x4b1   : > { %v979_v43 = vpop.xlane.xlu0 %978 }
 0x4b2   : > { %v2054_v22 = vpop.eup %1551  ;;  %v684_v23 = vmul.f32 1.442695, %v658_v20  ;;  %v997_v9 = vsub.f32 %v1973_v57, %v979_v43 }
 0x4b3   : > { %v973_v35 = vpop.xlane.xlu1 %972  ;;  %1044 = vadd.xlane.f32.xlu1 %v2054_v22  ;;  %710 = vadd.xlane.f32.xlu0 %v2052_v21  ;;  %v2062_v27 = vpop.eup %1553 }
 0x4b4   : > { %1563 = vpow2.f32 %v684_v23  ;;  %v994_v33 = vsub.f32 %v1954_v50, %v973_v35  ;;  %v2064_v28 = vpop.eup %1555  ;;  %v1026_v48 = vmul.f32 1.442695, %v997_v9  ;;  %v357_v35 = vld [vmem:[%s2255_s4 + $0x20] sm:$0xff] }
 0x4b5   : > { %1565 = vpow2.f32 %v686_v25  ;;  %v2070_v50 = vpop.eup %1557  ;;  %v647_v63 = vpop.xlane.xlu0 %646 }
 0x4b6   : > { %v1020_v42 = vmul.f32 1.442695, %v994_v33  ;;  %v2072_v30 = vpop.eup %1559  ;;  %v663_v29 = vsub.f32 %v1926_v40, %v647_v63  ;;  %v2134_v33 = vpop.f32.mrb[8].mxu0 }
 0x4b7   : > { %v641_v44 = vpop.xlane.xlu1 %640  ;;  %1040 = vadd.xlane.f32.xlu1 %v2064_v28  ;;  %1042 = vadd.xlane.f32.xlu0 %v2062_v27  ;;  %v2077_v3 = vpop.eup %1561 }
 0x4b8   : > { %1567 = vpow2.f32 %v1020_v42  ;;  %v660_v51 = vsub.f32 %v1924_v39, %v641_v44  ;;  %v690_v39 = vmul.f32 1.442695, %v661_v62  ;;  %v694_v10 = vmul.f32 1.442695, %v663_v29  ;;  %v1383_v43 = vpop.f32.mrb[9].mxu0  ;;  %v1151_v42 = vld [vmem:[%s2257_s6 + $0x8] sm:$0xff] }
 0x4b9   : > { %1569 = vpow2.f32 %v1018_v58  ;;  %v983_v13 = vpop.xlane.xlu0 %982  ;;  %v358_v58 = vld [vmem:[%s2255_s4 + $0x28] sm:$0xff]  ;;  %v2142_v53 = vpop.f32.mrb[10].mxu0 }
 0x4ba   : > { %1571 = vpow2.f32 %v1016_v59  ;;  %v688_v0 = vmul.f32 1.442695, %v660_v51  ;;  %v999_v57 = vsub.f32 %v1971_v56, %v983_v13  ;;  %v1384_v44 = vpop.f32.mrb[11].mxu0 }
 0x4bb   : > { %712 = vadd.xlane.f32.xlu1 %v2072_v30  ;;  %v977_v52 = vpop.xlane.xlu1 %976  ;;  %1046 = vadd.xlane.f32.xlu0 %v2070_v50  ;;  %1573 = vpow2.f32 %v1022_v61 }
 0x4bc   : > { %1575 = vpow2.f32 %v688_v0  ;;  %v996_v47 = vsub.f32 %v1968_v55, %v977_v52 }
 0x4bd   : > { %1577 = vpow2.f32 %v690_v39 }
 0x4be   : > { %v2079_v31 = vpop.eup %1563  ;;  %v1024_v34 = vmul.f32 1.442695, %v996_v47 }
 0x4bf   : > { %716 = vadd.xlane.f32.xlu1 %v2079_v31  ;;  %v645_v5 = vpop.xlane.xlu1 %644  ;;  %714 = vadd.xlane.f32.xlu0 %v2077_v3  ;;  %v2085_v7 = vpop.eup %1565 }
 0x4c0   : > { %v662_v41 = vsub.f32 %v1922_v38, %v645_v5 }
 0x4c2   : > { %v2087_v8 = vpop.eup %1567  ;;  %v692_v49 = vmul.f32 1.442695, %v662_v41 }
 0x4c3   : > { %1052 = vadd.xlane.f32.xlu1 %v2087_v8  ;;  %v981_v40 = vpop.xlane.xlu1 %980  ;;  %718 = vadd.xlane.f32.xlu0 %v2085_v7  ;;  %v2094_v38 = vpop.eup %1569 }
 0x4c4   : > { %1579 = vpow2.f32 %v692_v49  ;;  %v998_v12 = vsub.f32 %v1966_v54, %v981_v40  ;;  %v2096_v14 = vpop.eup %1571  ;;  %v1030_v54 = vmul.f32 1.442695, %v999_v57 }
 0x4c5   : > { %1581 = vpow2.f32 %v694_v10  ;;  %v2101_v55 = vpop.eup %1573 }
 0x4c6   : > { %v1028_v15 = vmul.f32 1.442695, %v998_v12  ;;  %v2103_v18 = vpop.eup %1575 }
 0x4c7   : > { %1048 = vadd.xlane.f32.xlu1 %v2096_v14  ;;  %1050 = vadd.xlane.f32.xlu0 %v2094_v38  ;;  %v2107_v19 = vpop.eup %1577 }
 0x4c8   : > { %1583 = vpow2.f32 %v1028_v15 }
 0x4c9   : > { %1585 = vpow2.f32 %v1026_v48 }
 0x4ca   : > { %1587 = vpow2.f32 %v1024_v34 }
 0x4cb   : > { %720 = vadd.xlane.f32.xlu1 %v2103_v18  ;;  %1054 = vadd.xlane.f32.xlu0 %v2101_v55  ;;  %1589 = vpow2.f32 %v1030_v54 }
 0x4ce   : > { %v2109_v37 = vpop.eup %1579 }
 0x4cf   : > { %724 = vadd.xlane.f32.xlu1 %v2109_v37  ;;  %722 = vadd.xlane.f32.xlu0 %v2107_v19  ;;  %v2113_v56 = vpop.eup %1581 }
 0x4d2   : > { %v2115_v20 = vpop.eup %1583 }
 0x4d3   : > { %1060 = vadd.xlane.f32.xlu1 %v2115_v20  ;;  %726 = vadd.xlane.f32.xlu0 %v2113_v56  ;;  %v2119_v23 = vpop.eup %1585 }
 0x4d4   : > { %v2121_v24 = vpop.eup %1587 }
 0x4d5   : > { %v2125_v25 = vpop.eup %1589 }
 0x4d7   : > { %1056 = vadd.xlane.f32.xlu1 %v2121_v24  ;;  %1058 = vadd.xlane.f32.xlu0 %v2119_v23 }
 0x4db   : > { %1062 = vadd.xlane.f32.xlu0 %v2125_v25 }
 0x4e8   : > { %381 = vperm.xlu1 %1519, %v357_v35  }
 0x4ec   : > { %1154 = vperm.xlu1 %1519, %v1150_v26  }
 0x4f0   : > { %1159 = vperm.xlu1 %1519, %v1151_v42  }
 0x4f1   : > { %386 = vperm.xlu0 %1520, %v358_v58  }
 0x508   : > { %v701_v59 = vpop.xlane.xlu1 %700 }
 0x50c   : > { %v697_v51 = vpop.xlane.xlu1 %696 }
 0x50d   : > { %1591 = vrcp.f32 %v697_v51 }
 0x517   : > { %v1592_v5 = vpop.eup %1591 }
 0x518   : > { %v744_v10 = vmul.f32 %v1592_v5, %v2002_v2 }
 0x52c   : > { %v703_v61 = vpop.xlane.xlu0 %702 }
 0x530   : > { %v1037_v62 = vpop.xlane.xlu1 %1036  ;;  %v699_v52 = vpop.xlane.xlu0 %698 }
 0x531   : > { %1593 = vrcp.f32 %v699_v52 }
 0x532   : > { %1595 = vrcp.f32 %v703_v61 }
 0x534   : > { %v1033_v63 = vpop.xlane.xlu1 %1032  ;;  %v1035_v0 = vpop.xlane.xlu0 %1034 }
 0x535   : > { %1597 = vrcp.f32 %v1033_v63 }
 0x536   : > { %1599 = vrcp.f32 %v1035_v0 }
 0x537   : > { %1601 = vrcp.f32 %v701_v59 }
 0x538   : > { %v705_v39 = vpop.xlane.xlu1 %704  ;;  %v1039_v29 = vpop.xlane.xlu0 %1038 }
 0x539   : > { %1603 = vrcp.f32 %v1039_v29 }
 0x53a   : > { %1605 = vrcp.f32 %v1037_v62 }
 0x53b   : > { %v1594_v41 = vpop.eup %1593 }
 0x53c   : > { %v709_v49 = vpop.xlane.xlu1 %708  ;;  %v707_v9 = vpop.xlane.xlu0 %706  ;;  %v745_v40 = vmul.f32 %v1594_v41, %v2018_v60 }
 0x53d   : > { %v1596_v47 = vpop.eup %1595  ;;  %1607 = vrcp.f32 %v707_v9 }
 0x53e   : > { %v760_v13 = vpack.c.bf16 %v745_v40, %v744_v10  ;;  %1609 = vrcp.f32 %v705_v39  ;;  %v747_v2 = vmul.f32 %v1596_v47, %v2013_v45 }
 0x53f   : > { %v1598_v12 = vpop.eup %1597 }
 0x540   : > { %v1600_v15 = vpop.eup %1599  ;;  %v1045_v48 = vpop.xlane.xlu1 %1044  ;;  %v1080_v34 = vmul.f32 %v1598_v12, %v2029_v4  ;;  %1404 = vmatpush3.bf16.xpose.msra.mxu0 %v760_v13 }
 0x541   : > { %v711_v57 = vpop.xlane.xlu0 %710  ;;  %v1081_v54 = vmul.f32 %v1600_v15, %v2031_v6  ;;  %v1602_v35 = vpop.eup %1601  ;;  %1405 = vmatprep.subr.bf16.mxu0 %v1722_v36 }
 0x542   : > { %1611 = vrcp.f32 %v711_v57  ;;  %v746_v58 = vmul.f32 %v1602_v35, %v1999_v1 }
 0x543   : > { %v1096_v26 = vpack.c.bf16 %v1081_v54, %v1080_v34  ;;  %v1604_v60 = vpop.eup %1603 }
 0x544   : > { %v1041_v43 = vpop.xlane.xlu1 %1040  ;;  %v1606_v44 = vpop.eup %1605  ;;  %v761_v4 = vpack.c.bf16 %v747_v2, %v746_v58  ;;  %v1083_v6 = vmul.f32 %v1604_v60, %v2037_v46 }
 0x545   : > { %v1043_v42 = vpop.xlane.xlu0 %1042  ;;  %1613 = vrcp.f32 %v1041_v43  ;;  %1442 = vmatpush3.bf16.xpose.msra.mxu1 %v1096_v26  ;;  %v1082_v45 = vmul.f32 %v1606_v44, %v2022_v32 }
 0x546   : > { %1615 = vrcp.f32 %v1043_v42  ;;  %1443 = vmatprep.subr.bf16.mxu1 %v1722_v36 }
 0x547   : > { %v1608_v59 = vpop.eup %1607  ;;  %1617 = vrcp.f32 %v709_v49  ;;  %v1097_v52 = vpack.c.bf16 %v1083_v6, %v1082_v45 }
 0x548   : > { %v713_v51 = vpop.xlane.xlu1 %712  ;;  %1406 = vmatpush3.bf16.xpose.msra.mxu0 %v761_v4  ;;  %v1610_v62 = vpop.eup %1609  ;;  %v749_v1 = vmul.f32 %v1608_v59, %v2044_v16 }
 0x549   : > { %v1047_v61 = vpop.xlane.xlu0 %1046  ;;  %1407 = vmatprep.subr.bf16.mxu0 %v1722_v36  ;;  %v748_v46 = vmul.f32 %v1610_v62, %v2039_v11 }
 0x54a   : > { %1619 = vrcp.f32 %v1047_v61 }
 0x54b   : > { %1621 = vrcp.f32 %v1045_v48  ;;  %v762_v5 = vpack.c.bf16 %v749_v1, %v748_v46 }
 0x54c   : > { %v717_v63 = vpop.xlane.xlu1 %716  ;;  %v1612_v39 = vpop.eup %1611 }
 0x54d   : > { %v715_v0 = vpop.xlane.xlu0 %714  ;;  %1444 = vmatpush3.bf16.xpose.msra.mxu1 %v1097_v52  ;;  %v751_v11 = vmul.f32 %v1612_v39, %v2052_v21 }
 0x54e   : > { %1623 = vrcp.f32 %v715_v0  ;;  %1445 = vmatprep.subr.bf16.mxu1 %v1722_v36 }
 0x54f   : > { %v1614_v29 = vpop.eup %1613  ;;  %1625 = vrcp.f32 %v713_v51 }
 0x550   : > { %v1616_v32 = vpop.eup %1615  ;;  %v1053_v41 = vpop.xlane.xlu1 %1052  ;;  %v1084_v9 = vmul.f32 %v1614_v29, %v2064_v28  ;;  %1408 = vmatpush3.bf16.xpose.msra.mxu0 %v762_v5 }
 0x551   : > { %v719_v49 = vpop.xlane.xlu0 %718  ;;  %v1085_v16 = vmul.f32 %v1616_v32, %v2062_v27  ;;  %v1618_v10 = vpop.eup %1617  ;;  %1409 = vmatprep.subr.bf16.mxu0 %v1722_v36 }
 0x552   : > { %1627 = vrcp.f32 %v719_v49  ;;  %v750_v15 = vmul.f32 %v1618_v10, %v2046_v17 }
 0x553   : > { %v1098_v40 = vpack.c.bf16 %v1085_v16, %v1084_v9 }
 0x554   : > { %v1620_v47 = vpop.eup %1619  ;;  %v1049_v12 = vpop.xlane.xlu1 %1048  ;;  %v763_v28 = vpack.c.bf16 %v751_v11, %v750_v15 }
 0x555   : > { %v1051_v13 = vpop.xlane.xlu0 %1050  ;;  %1629 = vrcp.f32 %v1049_v12  ;;  %1446 = vmatpush3.bf16.xpose.msra.mxu1 %v1098_v40  ;;  %v1622_v48 = vpop.eup %1621  ;;  %v1087_v27 = vmul.f32 %v1620_v47, %v2070_v50 }
 0x556   : > { %1631 = vrcp.f32 %v1051_v13  ;;  %1447 = vmatprep.subr.bf16.mxu1 %v1722_v36  ;;  %v1086_v21 = vmul.f32 %v1622_v48, %v2054_v22 }
 0x557   : > { %1633 = vrcp.f32 %v717_v63 }
 0x558   : > { %v1624_v57 = vpop.eup %1623  ;;  %v721_v34 = vpop.xlane.xlu1 %720  ;;  %1410 = vmatpush3.bf16.xpose.msra.mxu0 %v763_v28  ;;  %v1099_v26 = vpack.c.bf16 %v1087_v27, %v1086_v21 }
 0x559   : > { %v1055_v54 = vpop.xlane.xlu0 %1054  ;;  %v1626_v35 = vpop.eup %1625  ;;  %1411 = vmatprep.subr.bf16.mxu0 %v1722_v36  ;;  %v753_v17 = vmul.f32 %v1624_v57, %v2077_v3 }
 0x55a   : > { %1635 = vrcp.f32 %v1055_v54  ;;  %v752_v50 = vmul.f32 %v1626_v35, %v2072_v30 }
 0x55b   : > { %1637 = vrcp.f32 %v1053_v41 }
 0x55c   : > { %v725_v2 = vpop.xlane.xlu1 %724  ;;  %v1628_v43 = vpop.eup %1627  ;;  %v764_v58 = vpack.c.bf16 %v753_v17, %v752_v50  ;;  %v1655_v50 = vld [vmem:[%s1820_s17] sm:$0xff] }
 0x55d   : > { %v723_v60 = vpop.xlane.xlu0 %722  ;;  %1448 = vmatpush3.bf16.xpose.msra.mxu1 %v1099_v26  ;;  %v755_v30 = vmul.f32 %v1628_v43, %v2085_v7 }
 0x55e   : > { %1639 = vrcp.f32 %v723_v60  ;;  %1449 = vmatprep.subr.bf16.mxu1 %v1722_v36 }
 0x55f   : > { %v1630_v42 = vpop.eup %1629  ;;  %1641 = vrcp.f32 %v721_v34 }
 0x560   : > { %v1632_v22 = vpop.eup %1631  ;;  %v1061_v44 = vpop.xlane.xlu1 %1060  ;;  %v1088_v6 = vmul.f32 %v1630_v42, %v2096_v14  ;;  %1412 = vmatpush3.bf16.xpose.msra.mxu0 %v764_v58 }
 0x561   : > { %v727_v4 = vpop.xlane.xlu0 %726  ;;  %v1089_v3 = vmul.f32 %v1632_v22, %v2094_v38  ;;  %v1634_v59 = vpop.eup %1633  ;;  %1413 = vmatprep.subr.bf16.mxu0 %v1722_v36  ;;  %v1656_v22 = vld [vmem:[%s1820_s17 + $0x8] sm:$0xff] }
 0x562   : > { %1643 = vrcp.f32 %v727_v4  ;;  %v754_v52 = vmul.f32 %v1634_v59, %v2079_v31 }
 0x563   : > { %v1100_v51 = vpack.c.bf16 %v1089_v3, %v1088_v6 }
 0x564   : > { %v1636_v61 = vpop.eup %1635  ;;  %v1057_v45 = vpop.xlane.xlu1 %1056  ;;  %v765_v14 = vpack.c.bf16 %v755_v30, %v754_v52 }
 0x565   : > { %v1059_v62 = vpop.xlane.xlu0 %1058  ;;  %1645 = vrcp.f32 %v1057_v45  ;;  %1450 = vmatpush3.bf16.xpose.msra.mxu1 %v1100_v51  ;;  %v1638_v1 = vpop.eup %1637  ;;  %v1091_v38 = vmul.f32 %v1636_v61, %v2101_v55 }
 0x566   : > { %1647 = vrcp.f32 %v1059_v62  ;;  %1451 = vmatprep.subr.bf16.mxu1 %v1722_v36  ;;  %v1090_v7 = vmul.f32 %v1638_v1, %v2087_v8 }
 0x567   : > { %1649 = vrcp.f32 %v725_v2 }
 0x568   : > { %v1640_v63 = vpop.eup %1639  ;;  %1414 = vmatpush3.bf16.xpose.msra.mxu0 %v765_v14  ;;  %v1101_v39 = vpack.c.bf16 %v1091_v38, %v1090_v7  ;;  %v382_v11 = vpop.permute.xlu1 %381 }
 0x569   : > { %v1063_v0 = vpop.xlane.xlu0 %1062  ;;  %v1642_v46 = vpop.eup %1641  ;;  %1415 = vmatprep.subr.bf16.mxu0 %v1722_v36  ;;  %v757_v31 = vmul.f32 %v1640_v63, %v2107_v19  ;;  %v465_v12 = vadd.f32 %v2134_v33, %v382_v11 }
 0x56a   : > { %1651 = vrcp.f32 %v1063_v0  ;;  %v756_v29 = vmul.f32 %v1642_v46, %v2103_v18 }
 0x56b   : > { %1653 = vrcp.f32 %v1061_v44  ;;  %v473_v15 = vpack.c.bf16 %v465_v12, %v465_v12 }
 0x56c   : > { %v1644_v5 = vpop.eup %1643  ;;  %v766_v32 = vpack.c.bf16 %v757_v31, %v756_v29 }
 0x56d   : > { %1452 = vmatpush3.bf16.xpose.msra.mxu1 %v1101_v39  ;;  %v759_v19 = vmul.f32 %v1644_v5, %v2113_v56 }
 0x56e   : > { %1453 = vmatprep.subr.bf16.mxu1 %v1722_v36 }
 0x56f   : > { %v1646_v55 = vpop.eup %1645 }
 0x570   : > { %v1648_v41 = vpop.eup %1647  ;;  %v1092_v49 = vmul.f32 %v1646_v55, %v2121_v24  ;;  %1416 = vmatpush3.bf16.xpose.msra.mxu0 %v766_v32  ;;  %v387_v13 = vpop.permute.xlu0 %386 }
 0x571   : > { %v1093_v8 = vmul.f32 %v1648_v41, %v2119_v23  ;;  %v1650_v9 = vpop.eup %1649  ;;  %1417 = vmatprep.subr.bf16.mxu0 %v1722_v36 }
 0x572   : > { %v758_v18 = vmul.f32 %v1650_v9, %v2109_v37  ;;  %v468_v37 = vadd.f32 %v2142_v53, %v387_v13  ;;  %v1524_v53 = vld [vmem:[%s2256_s5] sm:$0xff]  }
 0x573   : > { %v1102_v16 = vpack.c.bf16 %v1093_v8, %v1092_v49 }
 0x574   : > { %v1652_v10 = vpop.eup %1651  ;;  %v767_v47 = vpack.c.bf16 %v759_v19, %v758_v18  ;;  %v811_v48 = vpack.c.bf16 %v468_v37, %v468_v37 }
 0x575   : > { %1454 = vmatpush3.bf16.xpose.msra.mxu1 %v1102_v16  ;;  %v1654_v40 = vpop.eup %1653  ;;  %v1095_v24 = vmul.f32 %v1652_v10, %v2125_v25 }
 0x576   : > { %1455 = vmatprep.subr.bf16.mxu1 %v1722_v36  ;;  %v1094_v23 = vmul.f32 %v1654_v40, %v2115_v20 }
 0x578   : > { %1418 = vmatpush3.bf16.xpose.msra.mxu0 %v767_v47  ;;  %v1103_v56 = vpack.c.bf16 %v1095_v24, %v1094_v23 }
 0x579   : > { %1461 = vmatprep.subr.bf16.mxu0 %v1722_v36 }
 0x57d   : > { %1456 = vmatpush3.bf16.xpose.msra.mxu1 %v1103_v56 }
 0x57f   : > { %1420 = vmatmul.mubr.bf16.vlgmr.msra.gmra.mrb[12].mxu0 %v473_v15 }
 0x580   : > { %1463 = vmatprep.mubr.msk.bf16.mxu0 %vm1723_vm0, %v1722_v36  ;;  %v1155_v36 = vpop.permute.xlu1 %1154 }
 0x584   : > { %1458 = vmatmul.mubr.bf16.vlgmr.msra.gmra.mrb[32].mxu1 %v811_v48  ;;  %v1160_v2 = vpop.permute.xlu1 %1159 }
 0x652   : > { %v802_v25 = vpop.f32.mrb[12].mxu0 }
 0x653   : > { %v1421_v28 = vpop.f32.mrb[13].mxu0 }
 0x654   : > { %v805_v20 = vpop.f32.mrb[14].mxu0 }
 0x655   : > { %v1422_v27 = vpop.f32.mrb[15].mxu0 }
 0x657   : > { %v1138_v33 = vpop.f32.mrb[32].mxu1 }
 0x658   : > { %v1149_v57 = vpack.c.bf16 %v1138_v33, %v802_v25  ;;  %v1459_v34 = vpop.f32.mrb[33].mxu1 }
 0x659   : > { %v1141_v54 = vpop.f32.mrb[34].mxu1 }
 0x65a   : > { %v1460_v21 = vpop.f32.mrb[35].mxu1  ;;  %1462 = vmatpush3.bf16.msra.mxu0 %v1149_v57 }
 0x65d   : > { %1464 = vmatmul.mubr.msk.bf16.vlgmr.msra.gmra.mrb[16].mxu0 %vm404_vm1, %v1524_v53 }
 0x730   : > { %v1204_v35 = vpop.f32.mrb[16].mxu0 }
 0x731   : > { %v1205_v26 = vadd.f32 %v1204_v35, %v1155_v36  ;;  %v1465_v17 = vpop.f32.mrb[17].mxu0 }
 0x732   : > { %v1207_v60 = vpop.f32.mrb[18].mxu0 }
 0x733   : > { %v1211_v43 = vadd.f32 %v1655_v50, %v1205_v26  ;;  %v1208_v42 = vadd.f32 %v1207_v60, %v1160_v2  ;;  %v1466_v58 = vpop.f32.mrb[19].mxu0 }
 0x735   : > { %1213 = vst [vmem:[%s271_s22] sm:$0xff] %v1211_v43  ;;  %v1212_v44 = vadd.f32 %v1656_v22, %v1208_v42 }
 0x737   : > { %1214 = vst [vmem:[%s271_s22 + $0x8] sm:$0xff] %v1212_v44 }
 0x738   : > { %1670 = shalt.err (!%p1667_p3)
}
 0x739   : > { %s1671_s17 = scalar_lea.hbm %s2207_s9, 256  ;;  %s1675_s21 = scalar_lea.hbm %s2258_s7, 512 }
 0x73a   : > { %p1672_p4 = scmp.ne.s32.totalorder %s2207_s9, %s1671_s17  ;;  %p1676_p9 = scmp.lt.u32.totalorder %s2207_s9, %s2258_s7 }
 0x73b   : > { %p1677_p10 = scmp.lt.u32.totalorder %s1675_s21, %s1671_s17  ;;  %p1679_p12 = scmp.lt.u32.totalorder %s1671_s17, %s2207_s9 }
 0x73c   : > { %p1673_p7 = pnand %p1672_p4, %p1805_p5 }
 0x73d   : > { %p1678_p11 = por %p1677_p10, %p1676_p9 }
 0x73e   : > { %p1674_p8 = pneg %p1673_p7 }
 0x73f   : > { %p1680_p13 = por %p1679_p12, %p1678_p11 }
 0x741   : > { %p1681_p0 = pnand %p1680_p13, %p1674_p8 }
 0x743   : > { %1684 = shalt.err (!%p1681_p0)
}
 0x744   : > { %s1725_s29 = smov 128   ;;  %s1726_s8 = smov 8  }
 0x745   : > { %1475 = dma.vmem_to_hbm [thread:$0]  (%p1805_p5), %s2202_s23, 256, %s2207_s9, %s2210_s28, %s1725_s29, %s1725_s29, %s1726_s8  }
 0x746 PF: > { %p1481_p1 = scmp.ge.s32.totalorder %s1719_s27, 2  ;;  %s1244_s13 = sand.u32 1, %s1707_s24  }
 0x747   : > { %s1245_s14 = scalar_lea.sflag [#allocation4], %s1244_s13 }
 0x748   : > { %p1478_p2 = pnand %p1481_p1, %p1809_p6 }
 0x74a   : > { %1702 = dma.done.wait (!%p1478_p2), %s1245_s14, 256  }
 0x74b   : > { %1704 = vsyncadd (!%p1478_p2), %s1245_s14, 4294967040  ;;  %p17_p3 = scmp.ge.s32.totalorder %s1792_s30, 4   ;;  %s2261_s24 = smov %s1711_s25 }
 0x74c   : > { %s2262_s25 = smov %s1715_s26  ;;  %s2263_s26 = smov %s1803_s10 }
 0x74d   : > { %s2264_s27 = smov %s1792_s30  ;;  %19 = sbr.rel (!%p17_p3) target bundleno = 3 (0x3), region = 83 }
 0x754   :  { %1250 = vsyncpa [#allocation4], 1 }
 0x755   :  { %1252 = vsyncpa [#allocation4 + $0x1], 1 }

</bundles_post_ra>
